<compile_context>
chip_gen: v7x
topology: tpu7x:2x2x1
jax: 0.10.0
libtpu: 0.0.40
codegen_flags: <defaults>
</compile_context>

<pallas_src>
import functools

import jax
import jax.numpy as jnp
from jax.experimental import pallas as pl
from jax.experimental.pallas import tpu as pltpu


_BN_EPS = 1e-5
_BLOCK_BUDGET_BYTES = 4 * 1024 * 1024   # per-x-block target (two-pass fallback)
_LANE_BLOCK_CAP = 2048                  # HW (lane) tile cap, multiple of 128


# ---------------------------------------------------------------------------
# Sizing helpers
# ---------------------------------------------------------------------------
def _vmem_limit_bytes():
    """Generation-aware VMEM limit: ~3/4 of physical (96 MiB v5e/v6e, 48 MiB v7x)."""
    phys = None
    try:
        phys = getattr(pltpu.get_tpu_info(), "vmem_capacity_bytes", None)
    except Exception:
        phys = None
    if not phys:
        phys = 64 * 1024 * 1024          # conservative: v7x physical VMEM
    return int(phys) * 3 // 4


def _divisor_chain(C):
    """Legal channel (sublane) tiles: divisors of C that are multiples of 8,
    plus the full extent C itself.  Descending order."""
    out = {C}
    if C % 8 == 0:
        for k in range(1, C // 8 + 1):
            d = 8 * k
            if C % d == 0:
                out.add(d)
    return sorted(out, reverse=True)


def _fused_bc(N, C, HW, in_dtype, out_dtype, vmem_limit):
    """Largest legal channel tile whose (N, bc, HW) slab fits the fused-kernel
    budget; prefer >=2 channel tiles so the grid shards across v7x's two TCs.
    Returns None when even the smallest tile does not fit (-> two-pass path)."""
    in_b = jnp.dtype(in_dtype).itemsize
    out_b = jnp.dtype(out_dtype).itemsize

    def fits(bc):
        slab = N * bc * HW
        # 2 double-buffered input blocks + 2 output blocks + ~3 f32-sized temporaries
        need = slab * (2 * in_b + 2 * out_b + 3 * 4)
        return need <= vmem_limit

    fitting = [bc for bc in _divisor_chain(C) if fits(bc)]
    if not fitting:
        return None
    multi = [bc for bc in fitting if C // bc >= 2]   # megacore-friendly
    return multi[0] if multi else fitting[0]


def _pick_blocks(N, C, HW, vmem_limit):
    """(bn, bc, bhw) for the two-pass fallback, obeying the (8,128)/full-extent rule."""
    budget = min(_BLOCK_BUDGET_BYTES, max(vmem_limit // 12, 512 * 1024))
    elems = max(8 * 128, budget // 4)    # budget in f32-equivalent elements per block

    # Lane (HW) tile: keep it a big multiple of 128 (lane-dense stores), else full extent.
    if HW % 128 == 0:
        bhw = min(HW, _LANE_BLOCK_CAP)
        while HW % bhw:
            bhw -= 128
    else:
        bhw = HW   # full extent is always layout-legal
        # TODO(synk): for huge non-128-multiple HW with large C, a 4-D (bn,bc,H,W)
        # block (C as an unconstrained leading dim) would avoid oversized blocks.

    # Channel tile: prefer >=2 tiles (v7x megacore for pass 1), shrink before bhw.
    chain = _divisor_chain(C)
    pref = [d for d in chain if C // d >= 2] or chain
    bc = pref[-1]
    for d in pref:
        if d * bhw <= elems:
            bc = d
            break

    bn = max(1, min(N, elems // max(1, bc * bhw)))
    while N % bn:
        bn -= 1
    return bn, bc, bhw


# ---------------------------------------------------------------------------
# Fused single-pass kernel: stats + normalize + perturbed affine on a resident slab
# ---------------------------------------------------------------------------
def bn_fused_kernel(x_ref, w_ref, b_ref, o_ref, *, eps, inv_count):
    x = x_ref[...].astype(jnp.float32)                             # (N, bc, HW)
    s = jnp.sum(x, axis=0)                                         # (bc, HW)
    mean = (jnp.sum(s, axis=1, keepdims=True) * inv_count)[None]   # (1, bc, 1)
    xc = x - mean
    s2 = jnp.sum(xc * xc, axis=0)                                  # (bc, HW)
    var = (jnp.sum(s2, axis=1, keepdims=True) * inv_count)[None]   # (1, bc, 1)
    scale = w_ref[...][None] * jax.lax.rsqrt(var + eps)            # (1, bc, 1)
    shift = b_ref[...][None]
    o_ref[...] = (xc * scale + shift).astype(o_ref.dtype)


def _bn_fused(x3, w_col, b_col, bc, *, eps, vmem_limit):
    N, C, HW = x3.shape
    kernel = functools.partial(bn_fused_kernel, eps=eps, inv_count=1.0 / float(N * HW))
    return pl.pallas_call(
        kernel,
        out_shape=jax.ShapeDtypeStruct((N, C, HW), x3.dtype),
        grid_spec=pltpu.PrefetchScalarGridSpec(
            num_scalar_prefetch=0,
            grid=(C // bc,),
            in_specs=[pl.BlockSpec((N, bc, HW), lambda c: (0, c, 0)),
                      pl.BlockSpec((bc, 1), lambda c: (c, 0)),
                      pl.BlockSpec((bc, 1), lambda c: (c, 0))],
            out_specs=pl.BlockSpec((N, bc, HW), lambda c: (0, c, 0))),
        compiler_params=pltpu.CompilerParams(
            dimension_semantics=("parallel",),
            vmem_limit_bytes=vmem_limit),
    )(x3, w_col, b_col)


# ---------------------------------------------------------------------------
# Fallback pass 1: per-channel sum and sum-of-squares (reduction over N and H*W)
# ---------------------------------------------------------------------------
def bn_stats_kernel(x_ref, sum_ref, sq_ref, sum_acc, sq_acc):
    n_i = pl.program_id(1)
    r_i = pl.program_id(2)

    @pl.when(jnp.logical_and(n_i == 0, r_i == 0))
    def _():
        sum_acc[...] = jnp.zeros_like(sum_acc)
        sq_acc[...] = jnp.zeros_like(sq_acc)

    xb = x_ref[...].astype(jnp.float32)          # (bn, bc, bhw)
    sum_acc[...] += jnp.sum(xb, axis=0)          # lane-dense VPU accumulate, no XLU
    sq_acc[...] += jnp.sum(xb * xb, axis=0)

    @pl.when(jnp.logical_and(n_i == pl.num_programs(1) - 1,
                             r_i == pl.num_programs(2) - 1))
    def _():
        # single cross-lane reduce + (bc,1) store per channel tile
        sum_ref[...] = jnp.sum(sum_acc[...], axis=1, keepdims=True)
        sq_ref[...] = jnp.sum(sq_acc[...], axis=1, keepdims=True)


def _bn_channel_stats(x3, bn, bc, bhw, vmem_limit):
    N, C, HW = x3.shape
    grid = (C // bc, N // bn, HW // bhw)         # reduction axes (N, HW) last
    return pl.pallas_call(
        bn_stats_kernel,
        out_shape=(jax.ShapeDtypeStruct((C, 1), jnp.float32),
                   jax.ShapeDtypeStruct((C, 1), jnp.float32)),
        grid_spec=pltpu.PrefetchScalarGridSpec(
            num_scalar_prefetch=0,
            grid=grid,
            in_specs=[pl.BlockSpec((bn, bc, bhw), lambda c, n, r: (n, c, r))],
            out_specs=(pl.BlockSpec((bc, 1), lambda c, n, r: (c, 0)),
                       pl.BlockSpec((bc, 1), lambda c, n, r: (c, 0))),
            scratch_shapes=[pltpu.VMEM((bc, bhw), jnp.float32),
                            pltpu.VMEM((bc, bhw), jnp.float32)]),
        compiler_params=pltpu.CompilerParams(
            dimension_semantics=("parallel", "arbitrary", "arbitrary"),
            vmem_limit_bytes=vmem_limit),
    )(x3)


# ---------------------------------------------------------------------------
# Fallback pass 2: out = x * scale_c + shift_c (BN normalize + perturbed affine)
# ---------------------------------------------------------------------------
def bn_apply_kernel(x_ref, scale_ref, shift_ref, o_ref):
    scale = scale_ref[...][None]                 # (1, bc, 1)
    shift = shift_ref[...][None]
    o_ref[...] = (x_ref[...].astype(jnp.float32) * scale + shift).astype(o_ref.dtype)


def _bn_apply(x3, scale, shift, bn, bc, bhw, vmem_limit):
    N, C, HW = x3.shape
    grid = (N // bn, C // bc, HW // bhw)
    return pl.pallas_call(
        bn_apply_kernel,
        out_shape=jax.ShapeDtypeStruct((N, C, HW), x3.dtype),
        grid_spec=pltpu.PrefetchScalarGridSpec(
            num_scalar_prefetch=0,
            grid=grid,
            in_specs=[pl.BlockSpec((bn, bc, bhw), lambda n, c, r: (n, c, r)),
                      pl.BlockSpec((bc, 1), lambda n, c, r: (c, 0)),
                      pl.BlockSpec((bc, 1), lambda n, c, r: (c, 0))],
            out_specs=pl.BlockSpec((bn, bc, bhw), lambda n, c, r: (n, c, r))),
        compiler_params=pltpu.CompilerParams(
            dimension_semantics=("parallel", "parallel", "parallel"),
            vmem_limit_bytes=vmem_limit),
    )(x3, scale, shift)


# ---------------------------------------------------------------------------
# Forward wrapper == add_BN_2d.forward((x, prob, var))
# ---------------------------------------------------------------------------
def add_bn_2d_forward(x, prob, var, *, rng_key, weight_value=1.0, bias_value=1e-6,
                      eps=_BN_EPS, force_two_pass=False):
    N, C, H, W = x.shape
    HW = H * W
    x3 = x.reshape(N, C, HW)                     # native dtype; cast to f32 in-kernel

    # compressed-sensing perturbation of the (1,C,1,1) weight/bias parameters.
    # Only C random draws -> tiny wrapper glue; prob=None specialized at trace time.
    w_base = jnp.full((C,), weight_value, jnp.float32)
    b_base = jnp.full((C,), bias_value, jnp.float32)
    if prob is None:
        w_pert, b_pert = w_base, b_base
    else:
        kuw, knw, kub, knb = jax.random.split(rng_key, 4)
        uw = jax.random.uniform(kuw, (C,), jnp.float32)
        nw = jax.random.normal(knw, (C,), jnp.float32)
        ub = jax.random.uniform(kub, (C,), jnp.float32)
        nb = jax.random.normal(knb, (C,), jnp.float32)
        # torch.normal(mean=1, std=var) == 1 + var * N(0,1)
        w_pert = jnp.where(uw < prob, 1.0 + var * nw, 1.0) * w_base
        b_pert = jnp.where(ub < prob, 1.0 + var * nb, 1.0) * b_base

    vmem_limit = _vmem_limit_bytes()
    bc_fused = None if force_two_pass else _fused_bc(N, C, HW, x.dtype, x.dtype,
                                                     vmem_limit)

    if bc_fused is not None:
        # Single pass over x: 1 HBM read + 1 HBM write.
        out3 = _bn_fused(x3, w_pert[:, None], b_pert[:, None], bc_fused,
                         eps=eps, vmem_limit=vmem_limit)
    else:
        # Two-pass fallback for slabs that do not fit VMEM.
        bn_, bc, bhw = _pick_blocks(N, C, HW, vmem_limit)
        sums, sqs = _bn_channel_stats(x3, bn_, bc, bhw, vmem_limit)
        count = jnp.float32(N * HW)
        mean = sums / count
        var_b = jnp.maximum(sqs / count - mean * mean, 0.0)   # biased batch variance
        inv_std = jax.lax.rsqrt(var_b + eps)
        scale = w_pert[:, None] * inv_std                     # (C, 1)
        shift = b_pert[:, None] - scale * mean                # (C, 1)
        out3 = _bn_apply(x3, scale, shift, bn_, bc, bhw, vmem_limit)

    out = out3.reshape(N, C, H, W)
    # Module returns (x, prob, var); also return the perturbed parameters so the
    # caller can build an exact reference.
    return (out, prob, var), (w_pert, b_pert)


if __name__ == "__main__":
    def reference(x, w_pert, b_pert, eps=_BN_EPS):
        xf = x.astype(jnp.float32)
        C = x.shape[1]
        mean = jnp.mean(xf, axis=(0, 2, 3), keepdims=True)
        var_b = jnp.mean((xf - mean) ** 2, axis=(0, 2, 3), keepdims=True)
        x_hat = (xf - mean) * jax.lax.rsqrt(var_b + eps)
        return w_pert.reshape(1, C, 1, 1) * x_hat + b_pert.reshape(1, C, 1, 1)

    key = jax.random.PRNGKey(0)
    k_x, k_mask, k_x2 = jax.random.split(key, 3)

    # Small shapes consistent with the module: x is (N, C, H, W).
    N, C, H, W = 2, 8, 16, 16
    x = jax.random.normal(k_x, (N, C, H, W), jnp.float32)
    prob, var = 0.3, 0.5   # torch.normal(1, var) uses `var` as a std-dev

    # 1) fused single-pass path
    (out, _, _), (w_pert, b_pert) = add_bn_2d_forward(x, prob, var, rng_key=k_mask)
    out = jax.block_until_ready(out)
    assert jnp.allclose(out, reference(x, w_pert, b_pert), atol=1e-4, rtol=1e-4), \
        "mismatch (fused)"

    # 2) prob=None path: plain BN scaled by weight=1, shifted by bias=1e-6
    (out_none, _, _), (w0, b0) = add_bn_2d_forward(x, None, var, rng_key=k_mask)
    out_none = jax.block_until_ready(out_none)
    assert jnp.allclose(out_none, reference(x, w0, b0), atol=1e-4, rtol=1e-4), \
        "mismatch (prob=None)"

    # 3) two-pass fallback path (forced), same inputs -> same perturbation
    (out_tp, _, _), (w_tp, b_tp) = add_bn_2d_forward(x, prob, var, rng_key=k_mask,
                                                     force_two_pass=True)
    out_tp = jax.block_until_ready(out_tp)
    assert jnp.allclose(out_tp, reference(x, w_tp, b_tp), atol=1e-4, rtol=1e-4), \
        "mismatch (two-pass)"

    # 4) two-pass fallback with HW not a multiple of 128 (full-extent lane block)
    x_odd = jax.random.normal(k_x2, (2, 8, 12, 12), jnp.float32)
    (out_odd, _, _), (w_o, b_o) = add_bn_2d_forward(x_odd, prob, var, rng_key=k_mask,
                                                    force_two_pass=True)
    out_odd = jax.block_until_ready(out_odd)
    assert jnp.allclose(out_odd, reference(x_odd, w_o, b_o), atol=1e-4, rtol=1e-4), \
        "mismatch (two-pass, odd HW)"

    # 5) native bf16 streaming (cast to f32 happens inside the kernel only)
    x_bf = x.astype(jnp.bfloat16)
    (out_bf, _, _), (w_b, b_b) = add_bn_2d_forward(x_bf, prob, var, rng_key=k_mask)
    out_bf = jax.block_until_ready(out_bf)
    assert out_bf.dtype == jnp.bfloat16
    assert jnp.allclose(out_bf.astype(jnp.float32), reference(x_bf, w_b, b_b),
                        atol=5e-2, rtol=5e-2), "mismatch (bf16)"

    print("KERNEL_OK")
</pallas_src>

<mosaic_0001>
module attributes {stable_mosaic.version = 11 : i64} {
  func.func @bn_fused_kernel(%arg0: i32, %arg1: memref<2x8x256xf32, #tpu.memory_space<vmem>>, %arg2: memref<8x1xf32, #tpu.memory_space<vmem>>, %arg3: memref<8x1xf32, #tpu.memory_space<vmem>>, %arg4: memref<2x8x256xf32, #tpu.memory_space<vmem>>) attributes {dimension_semantics = [#tpu.dimension_semantics<parallel>], iteration_bounds = array<i64: 1>, scalar_prefetch = 0 : i64, scratch_operands = 0 : i64, tpu.core_type = #tpu.core_type<tc>, window_params = [{transform_indices = @transform_0, window_bounds = array<i64: 2, 8, 256>}, {transform_indices = @transform_1, window_bounds = array<i64: 8, 1>}, {transform_indices = @transform_2, window_bounds = array<i64: 8, 1>}, {transform_indices = @transform_3, window_bounds = array<i64: 2, 8, 256>}]} {
    %c0 = arith.constant 0 : index
    %c0_0 = arith.constant 0 : index
    %c0_1 = arith.constant 0 : index
    %0 = vector.load %arg1[%c0, %c0_0, %c0_1] : memref<2x8x256xf32, #tpu.memory_space<vmem>>, vector<2x8x256xf32>
    %cst = arith.constant dense<0.000000e+00> : vector<8x256xf32>
    %1 = vector.multi_reduction <add>, %0, %cst [0] : vector<2x8x256xf32> to vector<8x256xf32>
    %cst_2 = arith.constant dense<0.000000e+00> : vector<8xf32>
    %2 = vector.multi_reduction <add>, %1, %cst_2 [1] : vector<8x256xf32> to vector<8xf32>
    %3 = vector.shape_cast %2 : vector<8xf32> to vector<8x1xf32>
    %cst_3 = arith.constant 0.001953125 : f32
    %4 = vector.broadcast %cst_3 : f32 to vector<8x1xf32>
    %5 = arith.mulf %3, %4 : vector<8x1xf32>
    %6 = vector.shape_cast %5 : vector<8x1xf32> to vector<1x8x1xf32>
    %7 = vector.broadcast %6 : vector<1x8x1xf32> to vector<2x8x256xf32>
    %8 = arith.subf %0, %7 : vector<2x8x256xf32>
    %9 = arith.mulf %8, %8 : vector<2x8x256xf32>
    %cst_4 = arith.constant dense<0.000000e+00> : vector<8x256xf32>
    %10 = vector.multi_reduction <add>, %9, %cst_4 [0] : vector<2x8x256xf32> to vector<8x256xf32>
    %cst_5 = arith.constant dense<0.000000e+00> : vector<8xf32>
    %11 = vector.multi_reduction <add>, %10, %cst_5 [1] : vector<8x256xf32> to vector<8xf32>
    %12 = vector.shape_cast %11 : vector<8xf32> to vector<8x1xf32>
    %cst_6 = arith.constant 0.001953125 : f32
    %13 = vector.broadcast %cst_6 : f32 to vector<8x1xf32>
    %14 = arith.mulf %12, %13 : vector<8x1xf32>
    %15 = vector.shape_cast %14 : vector<8x1xf32> to vector<1x8x1xf32>
    %c0_7 = arith.constant 0 : index
    %c0_8 = arith.constant 0 : index
    %16 = vector.load %arg2[%c0_7, %c0_8] : memref<8x1xf32, #tpu.memory_space<vmem>>, vector<8x1xf32>
    %17 = vector.shape_cast %16 : vector<8x1xf32> to vector<1x8x1xf32>
    %cst_9 = arith.constant 9.99999974E-6 : f32
    %18 = vector.broadcast %cst_9 : f32 to vector<1x8x1xf32>
    %19 = arith.addf %15, %18 : vector<1x8x1xf32>
    %20 = math.rsqrt %19 : vector<1x8x1xf32>
    %21 = arith.mulf %17, %20 : vector<1x8x1xf32>
    %c0_10 = arith.constant 0 : index
    %c0_11 = arith.constant 0 : index
    %22 = vector.load %arg3[%c0_10, %c0_11] : memref<8x1xf32, #tpu.memory_space<vmem>>, vector<8x1xf32>
    %23 = vector.shape_cast %22 : vector<8x1xf32> to vector<1x8x1xf32>
    %24 = vector.broadcast %21 : vector<1x8x1xf32> to vector<2x8x256xf32>
    %25 = arith.mulf %8, %24 : vector<2x8x256xf32>
    %26 = vector.broadcast %23 : vector<1x8x1xf32> to vector<2x8x256xf32>
    %27 = arith.addf %25, %26 : vector<2x8x256xf32>
    %c0_12 = arith.constant 0 : index
    %c0_13 = arith.constant 0 : index
    %c0_14 = arith.constant 0 : index
    %28 = vector.load %arg4[%c0_12, %c0_13, %c0_14] : memref<2x8x256xf32, #tpu.memory_space<vmem>>, vector<2x8x256xf32>
    tpu.vector_store %arg4[%c0_12, %c0_13, %c0_14], %27 {strides = array<i32>} : memref<2x8x256xf32, #tpu.memory_space<vmem>>, vector<2x8x256xf32>,
    return
  }
  func.func @transform_0(%arg0: i32) -> (i32, i32, i32) {
    %c0_i32 = arith.constant 0 : i32
    %c0_i32_0 = arith.constant 0 : i32
    %c0_i32_1 = arith.constant 0 : i32
    return %c0_i32, %arg0, %c0_i32_0 : i32, i32, i32
  }
  func.func @transform_1(%arg0: i32) -> (i32, i32) {
    %c0_i32 = arith.constant 0 : i32
    %c0_i32_0 = arith.constant 0 : i32
    return %arg0, %c0_i32 : i32, i32
  }
  func.func @transform_2(%arg0: i32) -> (i32, i32) {
    %c0_i32 = arith.constant 0 : i32
    %c0_i32_0 = arith.constant 0 : i32
    return %arg0, %c0_i32 : i32, i32
  }
  func.func @transform_3(%arg0: i32) -> (i32, i32, i32) {
    %c0_i32 = arith.constant 0 : i32
    %c0_i32_0 = arith.constant 0 : i32
    %c0_i32_1 = arith.constant 0 : i32
    return %c0_i32, %arg0, %c0_i32_0 : i32, i32, i32
  }
}

</mosaic_0001>

<bundles_post_ra>
// kernel: tpu_custom_call.1
= control target key start
LH: loop header
LB: loop body
LE: loop exit
PB: predicated region body
PF: predicated region fallthrough
CT: control target
= control target key end

     0   :  { %8 = vsyncpa [#allocation3], 0  ;;  %s215_s0 = inlined_call_operand.hbm [shape: f32[2,8,256], index: 0, kind: input, shape index: {}]   ;;  %s216_s1 = inlined_call_operand.vmem [shape: f32[8,1], index: 1, kind: input, shape index: {}]   ;;  %s217_s2 = inlined_call_operand.vmem [shape: f32[8,1], index: 2, kind: input, shape index: {}]   ;;  %s218_s3 = inlined_call_operand.hbm [shape: f32[2,8,256], index: 3, kind: output, shape index: {}]  }
   0x1   :  { %9 = vsyncpa [#allocation4], 0  ;;  %s154_s12 = smov [#allocation2]   ;;  %s106_s16 = scalar_lea.hbm %s215_s0, 512 }
   0x2   :  { %s15_s13 = sshll.u32 %s154_s12, 4  ;;  %p107_p0 = scmp.ne.s32.totalorder %s215_s0, %s106_s16  ;;  %s16_s13 = int_to_ptr.vmem [resolvable:$true] %s15_s13 }
   0x3   :  { %p110_p1 = scmp.lt.u32.totalorder %s106_s16, %s215_s0 }
   0x5   :  { %p112_p2 = pnand %p110_p1, %p107_p0 }
   0x7   :  { %115 = shalt.err (!%p112_p2)
}
   0x8   :  { %s116_s21 = scalar_lea.vmem %s16_s13, 512  ;;  %p121_p4 = scmp.lt.s32.totalorder %s16_s13, %s16_s13 }
   0x9   :  { %p117_p3 = scmp.ne.s32.totalorder %s16_s13, %s116_s21  ;;  %p122_p5 = scmp.lt.s32.totalorder %s116_s21, %s116_s21 }
   0xb   :  { %p123_p6 = por %p122_p5, %p121_p4 }
   0xd   :  { %p124_p7 = pnand %p123_p6, %p117_p3 }
   0xf   :  { %127 = shalt.err (!%p124_p7)
}
  0x10   :  { %s155_s22 = smov 256   ;;  %s156_s23 = smov 16  }
  0x11   :  { %21 = dma.hbm_to_vmem [thread:$0]  %s215_s0, 512, %s16_s13, [#allocation3], %s155_s22, %s155_s22, %s156_s23  }
  0x12   :  { %150 = dma.done.wait [#allocation3], 512  }
  0x13   :  { %151 = vsyncadd [#allocation3], 4294966784  ;;  %v29_v0 = vld [vmem:[#allocation2] sm:$0xff]  ;;  %v30_v1 = vld [vmem:[#allocation2 + $0x8] sm:$0xff]  ;;  %v157_v20 = vmov 0   ;;  %s158_s29 = smov [#allocation5]  }
  0x14   :  { %v31_v2 = vld [vmem:[#allocation2 + $0x10] sm:$0xff]  ;;  %v32_v3 = vld [vmem:[#allocation2 + $0x18] sm:$0xff]  ;;  %102 = vset.pattern.permute.xlu1 %v157_v20  ;;  %103 = vset.pattern.permute.xlu0 %v157_v20  ;;  %v53_v24 = vld [vmem:[%s216_s1] sm:$0xff]  ;;  %s85_s30 = sshll.u32 %s158_s29, 4  ;;  %s86_s30 = int_to_ptr.vmem [resolvable:$true] %s85_s30 }
  0x15   :  { %v33_v4 = vadd.f32 %v31_v2, %v29_v0  ;;  %v34_v5 = vadd.f32 %v32_v3, %v30_v1  ;;  %v57_v27 = vld [vmem:[%s217_s2] sm:$0xff]  ;;  %s128_s1 = scalar_lea.vmem %s86_s30, 512  ;;  %p133_p9 = scmp.lt.s32.totalorder %s86_s30, %s86_s30 }
  0x16   :  { %p129_p8 = scmp.ne.s32.totalorder %s86_s30, %s128_s1  ;;  %p134_p10 = scmp.lt.s32.totalorder %s128_s1, %s128_s1 }
  0x17   :  { %v35_v6 = vadd.f32 %v34_v5, %v33_v4 }
  0x18   :  { %p135_p11 = por %p134_p10, %p133_p9 }
  0x19   :  { %36 = vadd.xlane.f32.xlu0 %v35_v6 }
  0x1a   :  { %p136_p12 = pnand %p135_p11, %p129_p8 }
  0xa6   :  { %v37_v7 = vpop.xlane.xlu0 %36 }
  0xa7   :  { %v38_v8 = vmul.f32 0.001953125, %v37_v7 }
  0xa9   :  { %v39_v9 = vsub.f32 %v29_v0, %v38_v8  ;;  %v40_v10 = vsub.f32 %v30_v1, %v38_v8  ;;  %v41_v11 = vsub.f32 %v31_v2, %v38_v8  ;;  %v42_v12 = vsub.f32 %v32_v3, %v38_v8 }
  0xab   :  { %v43_v13 = vmul.f32 %v39_v9, %v39_v9  ;;  %v44_v14 = vmul.f32 %v40_v10, %v40_v10  ;;  %v45_v15 = vmul.f32 %v41_v11, %v41_v11  ;;  %v46_v16 = vmul.f32 %v42_v12, %v42_v12 }
  0xad   :  { %v47_v17 = vadd.f32 %v45_v15, %v43_v13  ;;  %v48_v18 = vadd.f32 %v46_v16, %v44_v14 }
  0xaf   :  { %v49_v19 = vadd.f32 %v48_v18, %v47_v17 }
  0xb1   :  { %50 = vadd.xlane.f32.xlu0 %v49_v19 }
 0x13e   :  { %v51_v21 = vpop.xlane.xlu0 %50 }
 0x13f   :  { %v52_v22 = vmul.f32 0.001953125, %v51_v21 }
 0x141   :  { %v54_v23 = vadd.f32 1e-05, %v52_v22 }
 0x143   :  { %104 = vrsqrt.f32 %v54_v23 }
 0x14d   :  { %v105_v25 = vpop.eup %104 }
 0x14e   :  { %v56_v26 = vmul.f32 %v105_v25, %v53_v24 }
 0x150   :  { %60 = vperm.xlu1 %102, %v56_v26  }
 0x154   :  { %69 = vperm.xlu1 %102, %v57_v27  }
 0x1cf   :  { %v61_v28 = vpop.permute.xlu1 %60 }
 0x1d0   :  { %v63_v29 = vmul.f32 %v61_v28, %v39_v9  ;;  %v64_v30 = vmul.f32 %v61_v28, %v40_v10  ;;  %v65_v31 = vmul.f32 %v61_v28, %v41_v11  ;;  %v66_v32 = vmul.f32 %v61_v28, %v42_v12 }
 0x1d3   :  { %v70_v33 = vpop.permute.xlu1 %69 }
 0x1d4   :  { %v72_v34 = vadd.f32 %v70_v33, %v63_v29  ;;  %v73_v35 = vadd.f32 %v70_v33, %v64_v30  ;;  %v74_v36 = vadd.f32 %v70_v33, %v65_v31  ;;  %v75_v37 = vadd.f32 %v70_v33, %v66_v32 }
 0x1d6   :  { %76 = vst [vmem:[#allocation5] sm:$0xff] %v72_v34  ;;  %77 = vst [vmem:[#allocation5 + $0x8] sm:$0xff] %v73_v35 }
 0x1d7   :  { %78 = vst [vmem:[#allocation5 + $0x10] sm:$0xff] %v74_v36  ;;  %79 = vst [vmem:[#allocation5 + $0x18] sm:$0xff] %v75_v37 }
 0x1d8   :  { %139 = shalt.err (!%p136_p12)
}
 0x1d9   :  { %s140_s5 = scalar_lea.hbm %s218_s3, 512 }
 0x1da   :  { %p141_p13 = scmp.ne.s32.totalorder %s218_s3, %s140_s5  ;;  %p144_p0 = scmp.lt.u32.totalorder %s140_s5, %s218_s3 }
 0x1dc   :  { %p146_p1 = pnand %p144_p0, %p141_p13 }
 0x1de   :  { %149 = shalt.err (!%p146_p1)
}
 0x1df   :  { %91 = dma.vmem_to_hbm [thread:$0]  %s86_s30, 512, %s218_s3, [#allocation4], %s155_s22, %s155_s22, %s156_s23  }
 0x1e0   :  { %152 = dma.done.wait [#allocation4], 512  }
 0x1e1   :  { %153 = vsyncadd [#allocation4], 4294966784 }
 0x1e2   :  { %95 = vsyncpa [#allocation3], 1 }
 0x1e3   :  { %96 = vsyncpa [#allocation4], 1 }

</bundles_post_ra>
